<compile_context>
chip_gen: v5e
topology: v5e:2x2
jax: 0.10.0
libtpu: 0.0.40
codegen_flags: <defaults>
</compile_context>

<pallas_src>
import math

import jax
import jax.numpy as jnp
from jax.experimental import pallas as pl
from jax.experimental.pallas import tpu as pltpu


def _round_up(x, m):
    return (x + m - 1) // m * m


def proj_logsoftmax_kernel(x_ref, wt_ref, b_ref, out_ref,
                           logits_ref, m_ref, l_ref):
    # x_ref:      (TM, D)       activation tile (resident across vocab axis)
    # wt_ref:     (D, TV)       transposed weight tile
    # b_ref:      (1, TV)       bias tile
    # out_ref:    (TM, V)       log-probs; resident across vocab axis, written
    #                           only on the final vocab step
    # logits_ref: (NV, TM, TV)  f32 logits scratch for the current row tile
    # m_ref/l_ref:(TM, 1)       running row max / running sum of exp
    k = pl.program_id(1)
    nv = pl.num_programs(1)

    @pl.when(k == 0)
    def _init():
        m_ref[...] = jnp.full_like(m_ref, -jnp.inf)
        l_ref[...] = jnp.zeros_like(l_ref)

    # MXU matmul in the input dtype, f32 accumulation.
    chunk = jnp.dot(x_ref[...], wt_ref[...],
                    preferred_element_type=jnp.float32)
    chunk = chunk + b_ref[...].astype(jnp.float32)          # (TM, TV) f32
    logits_ref[k] = chunk                                    # stash for final write

    # Online (flash-softmax style) running stats.
    m_prev = m_ref[...]
    m_new = jnp.maximum(m_prev, jnp.max(chunk, axis=-1, keepdims=True))
    alpha = jnp.exp(m_prev - m_new)
    l_ref[...] = alpha * l_ref[...] + jnp.sum(jnp.exp(chunk - m_new),
                                              axis=-1, keepdims=True)
    m_ref[...] = m_new

    @pl.when(k == nv - 1)
    def _finalize():
        lse = m_ref[...] + jnp.log(l_ref[...])               # (TM, 1) f32
        n_vocab_tiles, _, tv = logits_ref.shape              # static Python ints
        for j in range(n_vocab_tiles):                       # static unroll, static lane slices
            out_ref[:, j * tv:(j + 1) * tv] = (
                logits_ref[j] - lse).astype(out_ref.dtype)


def _vmem_bytes(tm, tv, nv, d, v, x_it, w_it, out_it):
    wt_bufs = 1 if nv == 1 else 2            # streamed tiles are double-buffered
    return (2 * tm * d * x_it                # x tile (double buffered)
            + wt_bufs * d * tv * w_it        # weight tile(s)
            + wt_bufs * tv * w_it            # bias tile(s)
            + 2 * tm * v * out_it            # resident output (double buffered)
            + tm * v * 4                     # f32 logits scratch
            + 4 * tm * 4)                    # running max / sum


def _choose_tiles(n, d, v, x_dtype, out_dtype, vmem_budget):
    x_it = jnp.dtype(x_dtype).itemsize
    out_it = jnp.dtype(out_dtype).itemsize
    # Sub-32-bit dtypes pack rows along sublanes: keep TM a multiple of the pack.
    pack = max(8, 32 // x_it)
    # Target the MXU row dim instead of shrinking to a small divisor of N;
    # ragged N is handled by padding in the wrapper.
    tm = min(256, _round_up(n, pack))
    tv_cands = [v] + [t for t in (8192, 4096, 2048, 1024, 512, 256, 128)
                      if t < v and v % t == 0]
    while True:
        for tv in tv_cands:
            nv = v // tv
            if _vmem_bytes(tm, tv, nv, d, v, x_it, x_it, out_it) <= vmem_budget:
                return tm, tv
        if tm <= pack:
            return tm, tv_cands[-1]          # best effort (see TODO at top)
        tm = max(pack, _round_up(tm // 2, pack))


def projection_layer(x, weight, bias, *, out_dtype=None, tile_m=None, tile_v=None,
                     vmem_budget_bytes=40 * 2**20):
    """log_softmax(x @ weight.T + bias, axis=-1).

    x: (..., d_model); weight: (vocab, d_model) [nn.Linear layout]; bias: (vocab,).
    """
    *lead, d_model = x.shape
    vocab, d_model_w = weight.shape
    assert d_model == d_model_w, "weight / activation d_model mismatch"
    out_dtype = x.dtype if out_dtype is None else jnp.dtype(out_dtype)

    n = 1
    for s in lead:
        n *= s
    x2 = x.reshape(n, d_model)

    # NOTE: in a real model store the projection weight as (d_model, vocab) so
    # this transpose happens once at parameter-init time, not per forward call.
    wt = jnp.transpose(weight)               # (d_model, vocab) — MXU-friendly
    b2 = bias.reshape(1, vocab)              # lane-dense bias row

    tm, tv = _choose_tiles(n, d_model, vocab, x.dtype, out_dtype, vmem_budget_bytes)
    pack = max(8, 32 // jnp.dtype(x.dtype).itemsize)
    if tile_m is not None:
        tm = _round_up(min(tile_m, _round_up(n, pack)), pack)
    if tile_v is not None and vocab % tile_v == 0 and tile_v % 128 == 0:
        tv = tile_v
    nv = vocab // tv

    n_pad = _round_up(n, tm)
    if n_pad != n:
        x2 = jnp.pad(x2, ((0, n_pad - n), (0, 0)))   # padded rows sliced off below
    nt = n_pad // tm
    grid = (nt, nv)

    x_it = jnp.dtype(x.dtype).itemsize
    w_it = jnp.dtype(wt.dtype).itemsize
    out_it = jnp.dtype(out_dtype).itemsize

    # Honest cost estimate: weight streamed once per row tile (once total when
    # it is grid-invariant), output counted in its actual dtype.
    w_reads = 1 if nv == 1 else nt
    cost = pl.CostEstimate(
        flops=2 * n_pad * d_model * vocab,
        transcendentals=n_pad * vocab + n_pad,        # exp per logit + log per row
        bytes_accessed=(n_pad * d_model * x_it
                        + w_reads * d_model * vocab * w_it
                        + w_reads * vocab * w_it
                        + n_pad * vocab * out_it),
    )

    needed = _vmem_bytes(tm, tv, nv, d_model, vocab, x_it, w_it, out_it)
    vmem_limit = int(min(64 * 2**20, max(32 * 2**20, needed * 5 // 4)))

    if nv == 1:
        # Grid-invariant operands: single whole-array VMEM copy, no per-step
        # double buffering (zero overlap benefit, 2x VMEM cost otherwise).
        wt_spec = pl.BlockSpec(memory_space=pltpu.MemorySpace.VMEM)
        b_spec = pl.BlockSpec(memory_space=pltpu.MemorySpace.VMEM)
    else:
        wt_spec = pl.BlockSpec((d_model, tv), lambda i, k: (0, k))
        b_spec = pl.BlockSpec((1, tv), lambda i, k: (0, k))

    out = pl.pallas_call(
        proj_logsoftmax_kernel,
        out_shape=jax.ShapeDtypeStruct((n_pad, vocab), out_dtype),
        grid=grid,
        in_specs=[
            pl.BlockSpec((tm, d_model), lambda i, k: (i, 0)),   # activation tile
            wt_spec,
            b_spec,
        ],
        out_specs=pl.BlockSpec((tm, vocab), lambda i, k: (i, 0)),  # resident over k
        scratch_shapes=[
            pltpu.VMEM((nv, tm, tv), jnp.float32),   # logits of one row tile
            pltpu.VMEM((tm, 1), jnp.float32),        # running max
            pltpu.VMEM((tm, 1), jnp.float32),        # running sum of exp
        ],
        compiler_params=pltpu.CompilerParams(
            dimension_semantics=("parallel", "arbitrary"),
            vmem_limit_bytes=vmem_limit,
        ),
        cost_estimate=cost,
    )(x2, wt, b2)

    if n_pad != n:
        out = out[:n]
    return out.reshape(*lead, vocab)


if __name__ == "__main__":
    d_model = 32
    vocab_size = 128          # multiple of 128 -> lane-dense output stores
    batch, seq = 2, 8

    key = jax.random.PRNGKey(0)
    k_x, k_w, k_b = jax.random.split(key, 3)

    # nn.Linear-style deterministic synthetic parameters.
    bound = 1.0 / math.sqrt(d_model)
    weight = jax.random.uniform(k_w, (vocab_size, d_model),
                                minval=-bound, maxval=bound, dtype=jnp.float32)
    bias = jax.random.uniform(k_b, (vocab_size,),
                              minval=-bound, maxval=bound, dtype=jnp.float32)
    x = jax.random.normal(k_x, (batch, seq, d_model), dtype=jnp.float32)

    # 1) Default path (single vocab tile, grid-invariant weight in VMEM).
    out = jax.block_until_ready(projection_layer(x, weight, bias))
    logits_ref = jnp.einsum("bsd,vd->bsv", x, weight) + bias
    ref = jax.nn.log_softmax(logits_ref, axis=-1)
    assert out.shape == (batch, seq, vocab_size)
    assert jnp.allclose(out, ref, atol=1e-4, rtol=1e-4), \
        float(jnp.max(jnp.abs(out - ref)))

    # 2) Exercise the streamed-W^T / online log-softmax path and a multi-row-
    #    tile grid via explicit tile overrides (vocab=256 split into 2 tiles).
    vocab2 = 256
    k_w2, k_b2 = jax.random.split(k_w)
    weight2 = jax.random.uniform(k_w2, (vocab2, d_model),
                                 minval=-bound, maxval=bound, dtype=jnp.float32)
    bias2 = jax.random.uniform(k_b2, (vocab2,),
                               minval=-bound, maxval=bound, dtype=jnp.float32)
    out2 = jax.block_until_ready(
        projection_layer(x, weight2, bias2, tile_m=8, tile_v=128))
    ref2 = jax.nn.log_softmax(jnp.einsum("bsd,vd->bsv", x, weight2) + bias2, axis=-1)
    assert out2.shape == (batch, seq, vocab2)
    assert jnp.allclose(out2, ref2, atol=1e-4, rtol=1e-4), \
        float(jnp.max(jnp.abs(out2 - ref2)))

    print("KERNEL_OK")
</pallas_src>

<mosaic_0001>
module attributes {stable_mosaic.version = 11 : i64} {
  func.func @proj_logsoftmax_kernel(%arg0: i32, %arg1: i32, %arg2: memref<16x32xf32, #tpu.memory_space<vmem>>, %arg3: memref<32x128xf32, #tpu.memory_space<vmem>>, %arg4: memref<1x128xf32, #tpu.memory_space<vmem>>, %arg5: memref<16x128xf32, #tpu.memory_space<vmem>>, %arg6: memref<1x16x128xf32, #tpu.memory_space<vmem>>, %arg7: memref<16x1xf32, #tpu.memory_space<vmem>>, %arg8: memref<16x1xf32, #tpu.memory_space<vmem>>) attributes {dimension_semantics = [#tpu.dimension_semantics<parallel>, #tpu.dimension_semantics<arbitrary>], iteration_bounds = array<i64: 1, 1>, scalar_prefetch = 0 : i64, scratch_operands = 3 : i64, tpu.core_type = #tpu.core_type<tc>, window_params = [{transform_indices = @transform_0, window_bounds = array<i64: 16, 32>}, {pipeline_mode = #tpu.pipeline_mode<synchronous>, transform_indices = @transform_1, window_bounds = array<i64: 32, 128>}, {pipeline_mode = #tpu.pipeline_mode<synchronous>, transform_indices = @transform_2, window_bounds = array<i64: 1, 128>}, {transform_indices = @transform_3, window_bounds = array<i64: 16, 128>}]} {
    %c0_i32 = arith.constant 0 : i32
    %0 = arith.cmpi eq, %arg1, %c0_i32 : i32
    %1 = arith.extui %0 : i1 to i32
    %c0_i32_0 = arith.constant 0 : i32
    %2 = arith.cmpi ne, %1, %c0_i32_0 : i32
    scf.if %2 {
      %cst_20 = arith.constant 0xFF800000 : f32
      %32 = vector.broadcast %cst_20 : f32 to vector<16x1xf32>
      %c0_21 = arith.constant 0 : index
      %c0_22 = arith.constant 0 : index
      %33 = vector.load %arg7[%c0_21, %c0_22] : memref<16x1xf32, #tpu.memory_space<vmem>>, vector<16x1xf32>
      tpu.vector_store %arg7[%c0_21, %c0_22], %32 {strides = array<i32>} : memref<16x1xf32, #tpu.memory_space<vmem>>, vector<16x1xf32>,
      %cst_23 = arith.constant 0.000000e+00 : f32
      %34 = vector.broadcast %cst_23 : f32 to vector<16x1xf32>
      %c0_24 = arith.constant 0 : index
      %c0_25 = arith.constant 0 : index
      %35 = vector.load %arg8[%c0_24, %c0_25] : memref<16x1xf32, #tpu.memory_space<vmem>>, vector<16x1xf32>
      tpu.vector_store %arg8[%c0_24, %c0_25], %34 {strides = array<i32>} : memref<16x1xf32, #tpu.memory_space<vmem>>, vector<16x1xf32>,
    } else {
    }
    %c0 = arith.constant 0 : index
    %c0_1 = arith.constant 0 : index
    %3 = vector.load %arg2[%c0, %c0_1] : memref<16x32xf32, #tpu.memory_space<vmem>>, vector<16x32xf32>
    %c0_2 = arith.constant 0 : index
    %c0_3 = arith.constant 0 : index
    %4 = vector.load %arg3[%c0_2, %c0_3] : memref<32x128xf32, #tpu.memory_space<vmem>>, vector<32x128xf32>
    %cst = arith.constant dense<0.000000e+00> : vector<16x128xf32>
    %5 = tpu.matmul %3, %4, %cst {dimension_numbers = #tpu.dot_dimension_numbers<[1], [0], [0], [1], [0, 0, 1, 1], [], []>} : vector<16x32xf32>, vector<32x128xf32>, vector<16x128xf32> -> vector<16x128xf32>
    %c0_4 = arith.constant 0 : index
    %c0_5 = arith.constant 0 : index
    %6 = vector.load %arg4[%c0_4, %c0_5] : memref<1x128xf32, #tpu.memory_space<vmem>>, vector<1x128xf32>
    %7 = vector.broadcast %6 : vector<1x128xf32> to vector<16x128xf32>
    %8 = arith.addf %5, %7 : vector<16x128xf32>
    %9 = arith.index_cast %arg1 : i32 to index
    %c0_6 = arith.constant 0 : index
    %c0_7 = arith.constant 0 : index
    %10 = vector.load %arg6[%9, %c0_6, %c0_7] : memref<1x16x128xf32, #tpu.memory_space<vmem>>, vector<1x16x128xf32>
    %11 = vector.shape_cast %10 : vector<1x16x128xf32> to vector<16x128xf32>
    %12 = vector.shape_cast %8 : vector<16x128xf32> to vector<1x16x128xf32>
    tpu.vector_store %arg6[%9, %c0_6, %c0_7], %12 {strides = array<i32>} : memref<1x16x128xf32, #tpu.memory_space<vmem>>, vector<1x16x128xf32>,
    %c0_8 = arith.constant 0 : index
    %c0_9 = arith.constant 0 : index
    %13 = vector.load %arg7[%c0_8, %c0_9] : memref<16x1xf32, #tpu.memory_space<vmem>>, vector<16x1xf32>
    %cst_10 = arith.constant dense<0xFF800000> : vector<16xf32>
    %14 = vector.multi_reduction <maximumf>, %8, %cst_10 [1] : vector<16x128xf32> to vector<16xf32>
    %15 = vector.shape_cast %14 : vector<16xf32> to vector<16x1xf32>
    %16 = arith.maximumf %13, %15 : vector<16x1xf32>
    %17 = arith.subf %13, %16 : vector<16x1xf32>
    %18 = math.exp %17 : vector<16x1xf32>
    %c0_11 = arith.constant 0 : index
    %c0_12 = arith.constant 0 : index
    %19 = vector.load %arg8[%c0_11, %c0_12] : memref<16x1xf32, #tpu.memory_space<vmem>>, vector<16x1xf32>
    %20 = arith.mulf %18, %19 : vector<16x1xf32>
    %21 = vector.broadcast %16 : vector<16x1xf32> to vector<16x128xf32>
    %22 = arith.subf %8, %21 : vector<16x128xf32>
    %23 = math.exp %22 : vector<16x128xf32>
    %cst_13 = arith.constant dense<0.000000e+00> : vector<16xf32>
    %24 = vector.multi_reduction <add>, %23, %cst_13 [1] : vector<16x128xf32> to vector<16xf32>
    %25 = vector.shape_cast %24 : vector<16xf32> to vector<16x1xf32>
    %26 = arith.addf %20, %25 : vector<16x1xf32>
    %c0_14 = arith.constant 0 : index
    %c0_15 = arith.constant 0 : index
    %27 = vector.load %arg8[%c0_14, %c0_15] : memref<16x1xf32, #tpu.memory_space<vmem>>, vector<16x1xf32>
    tpu.vector_store %arg8[%c0_14, %c0_15], %26 {strides = array<i32>} : memref<16x1xf32, #tpu.memory_space<vmem>>, vector<16x1xf32>,
    %c0_16 = arith.constant 0 : index
    %c0_17 = arith.constant 0 : index
    %28 = vector.load %arg7[%c0_16, %c0_17] : memref<16x1xf32, #tpu.memory_space<vmem>>, vector<16x1xf32>
    tpu.vector_store %arg7[%c0_16, %c0_17], %16 {strides = array<i32>} : memref<16x1xf32, #tpu.memory_space<vmem>>, vector<16x1xf32>,
    %c0_i32_18 = arith.constant 0 : i32
    %29 = arith.cmpi eq, %arg1, %c0_i32_18 : i32
    %30 = arith.extui %29 : i1 to i32
    %c0_i32_19 = arith.constant 0 : i32
    %31 = arith.cmpi ne, %30, %c0_i32_19 : i32
    scf.if %31 {
      %c0_20 = arith.constant 0 : index
      %c0_21 = arith.constant 0 : index
      %32 = vector.load %arg7[%c0_20, %c0_21] : memref<16x1xf32, #tpu.memory_space<vmem>>, vector<16x1xf32>
      %c0_22 = arith.constant 0 : index
      %c0_23 = arith.constant 0 : index
      %33 = vector.load %arg8[%c0_22, %c0_23] : memref<16x1xf32, #tpu.memory_space<vmem>>, vector<16x1xf32>
      %34 = math.log %33 : vector<16x1xf32>
      %35 = arith.addf %32, %34 : vector<16x1xf32>
      %c0_24 = arith.constant 0 : index
      %c0_25 = arith.constant 0 : index
      %c0_26 = arith.constant 0 : index
      %36 = vector.load %arg6[%c0_24, %c0_25, %c0_26] : memref<1x16x128xf32, #tpu.memory_space<vmem>>, vector<1x16x128xf32>
      %37 = vector.shape_cast %36 : vector<1x16x128xf32> to vector<16x128xf32>
      %38 = vector.broadcast %35 : vector<16x1xf32> to vector<16x128xf32>
      %39 = arith.subf %37, %38 : vector<16x128xf32>
      %c0_27 = arith.constant 0 : index
      %c0_28 = arith.constant 0 : index
      %40 = vector.load %arg5[%c0_27, %c0_28] : memref<16x128xf32, #tpu.memory_space<vmem>>, vector<16x128xf32>
      tpu.vector_store %arg5[%c0_27, %c0_28], %39 {strides = array<i32>} : memref<16x128xf32, #tpu.memory_space<vmem>>, vector<16x128xf32>,
    } else {
    }
    return
  }
  func.func @transform_0(%arg0: i32, %arg1: i32) -> (i32, i32) {
    %c0_i32 = arith.constant 0 : i32
    %c0_i32_0 = arith.constant 0 : i32
    return %arg0, %c0_i32 : i32, i32
  }
  func.func @transform_1(%arg0: i32, %arg1: i32) -> (i32, i32) {
    %c0_i32 = arith.constant 0 : i32
    %c0_i32_0 = arith.constant 0 : i32
    %c0_i32_1 = arith.constant 0 : i32
    return %c0_i32, %c0_i32_0 : i32, i32
  }
  func.func @transform_2(%arg0: i32, %arg1: i32) -> (i32, i32) {
    %c0_i32 = arith.constant 0 : i32
    %c0_i32_0 = arith.constant 0 : i32
    %c0_i32_1 = arith.constant 0 : i32
    return %c0_i32, %c0_i32_0 : i32, i32
  }
  func.func @transform_3(%arg0: i32, %arg1: i32) -> (i32, i32) {
    %c0_i32 = arith.constant 0 : i32
    %c0_i32_0 = arith.constant 0 : i32
    return %arg0, %c0_i32 : i32, i32
  }
}

</mosaic_0001>

<bundles_post_ra>
// kernel: tpu_custom_call.1
= control target key start
LH: loop header
LB: loop body
LE: loop exit
PB: predicated region body
PF: predicated region fallthrough
CT: control target
= control target key end

     0   :  { %8 = vsyncpa [#allocation6], 0  ;;  %s368_s0 = inlined_call_operand.hbm [shape: f32[16,32], index: 0, kind: input, shape index: {}]   ;;  %s369_s1 = inlined_call_operand.hbm [shape: f32[32,128], index: 1, kind: input, shape index: {}]   ;;  %s370_s2 = inlined_call_operand.vmem [shape: f32[1,128], index: 2, kind: input, shape index: {}]   ;;  %s371_s3 = inlined_call_operand.hbm [shape: f32[16,128], index: 3, kind: output, shape index: {}]  }
   0x1   :  { %9 = vsyncpa [#allocation9], 0 }
   0x2   :  { %10 = vsyncpa [#allocation7], 0  ;;  %s15_s14 = sshll.u32 %s368_s0, 4  ;;  %s301_s15 = smov [#allocation5]   ;;  %s16_s14 = int_to_ptr.hbm [resolvable:$true] %s15_s14 }
   0x3   :  { %s17_s16 = sshll.u32 %s301_s15, 4  ;;  %s28_s19 = sshll.u32 %s369_s1, 4  ;;  %s18_s16 = int_to_ptr.vmem [resolvable:$true] %s17_s16  ;;  %s29_s19 = int_to_ptr.hbm [resolvable:$true] %s28_s19 }
   0x4   :  { %s302_s20 = smov 128   ;;  %s303_s21 = smov 8  }
   0x5   :  { %23 = dma.hbm_to_vmem [thread:$0]  %s16_s14, 256, %s18_s16, [#allocation6], %s302_s20, %s302_s20, %s303_s21  }
   0x6   :  { %s304_s22 = smov [#allocation8]  }
   0x7   :  { %s30_s23 = sshll.u32 %s304_s22, 4  ;;  %s31_s23 = int_to_ptr.vmem [resolvable:$true] %s30_s23 }
   0x8   :  { %36 = dma.hbm_to_vmem [thread:$0]  %s29_s19, 512, %s31_s23, [#allocation9], %s302_s20, %s302_s20, %s303_s21  }
   0x9   :  { %295 = dma.done.wait [#allocation6], 256  }
   0xa   :  { %296 = vsyncadd [#allocation6], 4294967040 }
   0xb   :  { %297 = dma.done.wait [#allocation9], 512  }
   0xc   :  { %298 = vsyncadd [#allocation9], 4294966784  ;;  %v61_v0 = vld [vmem:[#allocation8 + $0x18] sm:$0xff]  ;;  %v60_v1 = vld [vmem:[#allocation8 + $0x10] sm:$0xff]  ;;  %vm66_vm0 = vcmask 261120   ;;  %vm51_vm1 = vcmask 7168  }
   0xd   :  { %85 = vmatpush.msra.mxu0 %v61_v0  ;;  %196 = vmatpush.msra.mxu1 %v61_v0  ;;  %v59_v2 = vld [vmem:[#allocation8 + $0x8] sm:$0xff]  ;;  %v58_v3 = vld [vmem:[#allocation8] sm:$0xff]  ;;  %v56_v4 = vld [vmem:[#allocation5] sm:$0xff]  ;;  %v305_v6 = vmov -inf   ;;  %v306_v12 = vmov 0   ;;  %v307_v13 = vmov 0.0  }
   0xe   :  { %v57_v5 = vld [vmem:[#allocation5 + $0x8] sm:$0xff]  ;;  %52 = vst.msk [vmem:[#allocation3] sm:$0xff] %vm51_vm1, %v305_v6  ;;  %v210_v7 = vld [vmem:[%s370_s2] ss:$0 sm:$0xff]  ;;  %208 = vset.pattern.permute.xlu1 %v306_v12  ;;  %209 = vset.pattern.permute.xlu0 %v306_v12  ;;  %s308_s2 = smov [#allocation10]   ;;  %s180_s27 = sshll.u32 %s371_s3, 4  ;;  %s181_s27 = int_to_ptr.hbm [resolvable:$true] %s180_s27 }
   0xf   :  { %86 = vmatpush.msra.mxu0 %v60_v1  ;;  %197 = vmatpush.msra.mxu1 %v60_v1  ;;  %53 = vst.msk [vmem:[#allocation3 + $0x8] sm:$0xff] %vm51_vm1, %v305_v6  ;;  %s178_s24 = sshll.u32 %s308_s2, 4  ;;  %s179_s24 = int_to_ptr.vmem [resolvable:$true] %s178_s24 }
  0x10   :  { %54 = vst.msk [vmem:[#allocation4] sm:$0xff] %vm51_vm1, %v307_v13 }
  0x11   :  { %87 = vmatpush.msra.mxu0 %v59_v2  ;;  %198 = vmatpush.msra.mxu1 %v59_v2  ;;  %55 = vst.msk [vmem:[#allocation4 + $0x8] sm:$0xff] %vm51_vm1, %v307_v13 }
  0x13   :  { %88 = vmatpush.msra.mxu0 %v58_v3  ;;  %199 = vmatpush.msra.mxu1 %v58_v3 }
  0x14   :  { %194 = vmatmul.msk.f32.vlgmr.msra.gmra.mxu0 %vm66_vm0, %v56_v4  ;;  %195 = vmatmul.msk.f32.vlgmr.msra.gmra.mxu1 %vm66_vm0, %v57_v5 }
  0x15   :  { %v100_v14 = vld [vmem:[#allocation3] sm:$0xff] }
  0x16   :  { %v101_v18 = vld [vmem:[#allocation3 + $0x8] sm:$0xff] }
  0x17   :  { %v114_v33 = vld [vmem:[#allocation4] sm:$0xff] }
  0x18   :  { %v115_v38 = vld [vmem:[#allocation4 + $0x8] sm:$0xff] }
  0x91   :  { %v90_v8 = vpop.f32.mrf.mxu0  ;;  %v93_v10 = vpop.f32.mrf.mxu1 }
  0x92   :  { %v346_v9 = vadd.f32 %v210_v7, %v90_v8  ;;  %v349_v11 = vadd.f32 %v210_v7, %v93_v10 }
  0x94   :  { %102 = vmax.xlane.f32.xlu0 %v346_v9 }
  0x9c   :  { %104 = vmax.xlane.f32.xlu0 %v349_v11 }
 0x107   :  { %v103_v15 = vpop.xlane.xlu0 %102 }
 0x108   :  { %v106_v16 = vmax.f32 %v100_v14, %v103_v15 }
 0x10a   :  { %v108_v17 = vsub.f32 %v100_v14, %v106_v16  ;;  %143 = vst.msk [vmem:[#allocation3] sm:$0xff] %vm51_vm1, %v106_v16  ;;  %120 = vperm.xlu1 %208, %v106_v16  }
 0x10c   :  { %v110_v30 = vmul.f32 1.442695, %v108_v17 }
 0x10f   :  { %v105_v19 = vpop.xlane.xlu0 %104 }
 0x110   :  { %v107_v20 = vmax.f32 %v101_v18, %v105_v19 }
 0x111   :  { %v148_v46 = vld [vmem:[#allocation3] sm:$0xff] }
 0x112   :  { %v109_v21 = vsub.f32 %v101_v18, %v107_v20  ;;  %144 = vst.msk [vmem:[#allocation3 + $0x8] sm:$0xff] %vm51_vm1, %v107_v20  ;;  %125 = vperm.xlu1 %208, %v107_v20  }
 0x114   :  { %v112_v31 = vmul.f32 1.442695, %v109_v21 }
 0x119   :  { %v149_v50 = vld [vmem:[#allocation3 + $0x8] sm:$0xff] }
 0x17c   :  { %v121_v22 = vpop.permute.xlu1 %120 }
 0x17d   :  { %v128_v23 = vsub.f32 %v346_v9, %v121_v22 }
 0x17f   :  { %v130_v24 = vmul.f32 1.442695, %v128_v23 }
 0x181   :  { %211 = vpow2.f32 %v130_v24 }
 0x184   :  { %v126_v25 = vpop.permute.xlu1 %125 }
 0x185   :  { %v129_v26 = vsub.f32 %v349_v11, %v126_v25 }
 0x187   :  { %v212_v27 = vpop.eup %211  ;;  %v132_v28 = vmul.f32 1.442695, %v129_v26 }
 0x188   :  { %134 = vadd.xlane.f32.xlu2 %v212_v27 }
 0x189   :  { %213 = vpow2.f32 %v132_v28 }
 0x18a   :  { %215 = vpow2.f32 %v110_v30 }
 0x18b   :  { %217 = vpow2.f32 %v112_v31 }
 0x18f   :  { %v214_v29 = vpop.eup %213 }
 0x190   :  { %136 = vadd.xlane.f32.xlu2 %v214_v29  ;;  %v216_v32 = vpop.eup %215 }
 0x191   :  { %v116_v34 = vmul.f32 %v216_v32, %v114_v33  ;;  %v218_v37 = vpop.eup %217 }
 0x192   :  { %v117_v39 = vmul.f32 %v218_v37, %v115_v38 }
 0x1fb   :  { %v135_v35 = vpop.xlane.xlu2 %134 }
 0x1fc   :  { %v138_v36 = vadd.f32 %v135_v35, %v116_v34 }
 0x1fe   :  { %141 = vst.msk [vmem:[#allocation4] sm:$0xff] %vm51_vm1, %v138_v36 }
 0x203   :  { %v137_v40 = vpop.xlane.xlu2 %136 }
 0x204   :  { %v139_v41 = vadd.f32 %v137_v40, %v117_v39 }
 0x205   :  { %v150_v42 = vld [vmem:[#allocation4] sm:$0xff] }
 0x206   :  { %142 = vst.msk [vmem:[#allocation4 + $0x8] sm:$0xff] %vm51_vm1, %v139_v41  ;;  %219 = vlog2.f32 %v150_v42 }
 0x20c   :  { %v220_v43 = vpop.eup %219 }
 0x20d   :  { %v153_v44 = vmul.f32 0.6931472, %v220_v43  ;;  %v151_v45 = vld [vmem:[#allocation4 + $0x8] sm:$0xff] }
 0x20e   :  { %221 = vlog2.f32 %v151_v45 }
 0x20f   :  { %v156_v47 = vadd.f32 %v153_v44, %v148_v46 }
 0x211   :  { %162 = vperm.xlu0 %209, %v156_v47  }
 0x214   :  { %v222_v48 = vpop.eup %221 }
 0x215   :  { %v155_v49 = vmul.f32 0.6931472, %v222_v48 }
 0x217   :  { %v157_v51 = vadd.f32 %v155_v49, %v149_v50 }
 0x219   :  { %167 = vperm.xlu1 %208, %v157_v51  }
 0x283   :  { %v163_v52 = vpop.permute.xlu0 %162 }
 0x284   :  { %v170_v53 = vsub.f32 %v346_v9, %v163_v52 }
 0x286   :  { %172 = vst [vmem:[#allocation10] sm:$0xff] %v170_v53 }
 0x28b   :  { %v168_v54 = vpop.permute.xlu1 %167 }
 0x28c   :  { %v171_v55 = vsub.f32 %v349_v11, %v168_v54 }
 0x28e   :  { %173 = vst [vmem:[#allocation10 + $0x8] sm:$0xff] %v171_v55 }
 0x28f   :  { %186 = dma.vmem_to_hbm [thread:$0]  %s179_s24, 256, %s181_s27, [#allocation7], %s302_s20, %s302_s20, %s303_s21  }
 0x290   :  { %299 = dma.done.wait [#allocation7], 256  }
 0x291   :  { %300 = vsyncadd [#allocation7], 4294967040 }
 0x292   :  { %191 = vsyncpa [#allocation6], 1 }
 0x293   :  { %192 = vsyncpa [#allocation9], 1 }
 0x294   :  { %193 = vsyncpa [#allocation7], 1 }

</bundles_post_ra>
